<compile_context>
chip_gen: v7x
topology: tpu7x:2x2x1
jax: 0.10.0
libtpu: 0.0.40
codegen_flags: <defaults>
</compile_context>

<pallas_src>
import functools

import jax
import jax.numpy as jnp
from jax import lax
from jax.experimental import pallas as pl
from jax.experimental.pallas import tpu as pltpu


def _mlp_sigmoid(avg, mx, w1t_ref, w2t_ref):
    """Shared MLP epilogue.  avg/mx: (tb, C) f32.

    fc2 is bias-free, so relu(fc1(avg)) + relu(fc1(mx)) can share one fc2
    matmul (exact).  LHS is cast to the weight dtype (no-op for f32 weights,
    keeps bf16 weights on the cheap MXU path); accumulation is f32."""
    w_dtype = w1t_ref.dtype
    h = jnp.maximum(
        jnp.dot(avg.astype(w_dtype), w1t_ref[...],
                preferred_element_type=jnp.float32), 0.0)
    h = h + jnp.maximum(
        jnp.dot(mx.astype(w_dtype), w1t_ref[...],
                preferred_element_type=jnp.float32), 0.0)
    y = jnp.dot(h.astype(w_dtype), w2t_ref[...],
                preferred_element_type=jnp.float32)
    return jax.nn.sigmoid(y)


def _channel_attention_kernel_tiled(x_ref, w1t_ref, w2t_ref, o_ref,
                                    sum_sc, max_sc, *, inv_hw, hw, thw,
                                    ragged_tail):
    # x_ref  : (tb, C, thw) streamed input tile (source dtype), thw % 128 == 0
    # w1t    : (C, hid)     fc1 weight transposed (resident across steps)
    # w2t    : (hid, C)     fc2 weight transposed (resident across steps)
    # o_ref  : (1, tb, C)   sigmoid attention, written on the last hw step
    # sum_sc : (tb, C, 128) f32 lane-aligned running spatial sum
    # max_sc : (tb, C, 128) f32 lane-aligned running spatial max
    k = pl.program_id(1)
    nfull = thw // 128

    @pl.when(k == 0)
    def _init():
        sum_sc[...] = jnp.zeros_like(sum_sc)
        max_sc[...] = jnp.full_like(max_sc, -jnp.inf)

    if ragged_tail:
        cols_left = hw - k * thw                       # valid columns this step
        lane = lax.broadcasted_iota(jnp.int32, sum_sc.shape, 2)

    # Per-step accumulation is VALU-only 128-lane chunk adds/maxes; the
    # cross-lane reduce is deferred to the finalize block below.
    s = sum_sc[...]
    m = max_sc[...]
    for j in range(nfull):                             # static unroll
        chunk = x_ref[:, :, j * 128:(j + 1) * 128].astype(jnp.float32)
        if ragged_tail:
            valid = lane < (cols_left - j * 128)
            s = s + jnp.where(valid, chunk, 0.0)
            m = jnp.maximum(m, jnp.where(valid, chunk, -jnp.inf))
        else:
            s = s + chunk
            m = jnp.maximum(m, chunk)
    sum_sc[...] = s
    max_sc[...] = m

    @pl.when(k == pl.num_programs(1) - 1)
    def _finalize():
        avg = jnp.sum(sum_sc[...], axis=-1) * inv_hw   # single XLU reduce
        mx = jnp.max(max_sc[...], axis=-1)
        o_ref[0] = _mlp_sigmoid(avg, mx, w1t_ref, w2t_ref).astype(o_ref.dtype)


def _channel_attention_kernel_single(x_ref, w1t_ref, w2t_ref, o_ref, *, inv_hw):
    # Single spatial step (HW fits one block and is not a 128-multiple).
    # Max needs no f32 upcast; the sum accumulates in f32.
    avg = jnp.sum(x_ref[...].astype(jnp.float32), axis=-1) * inv_hw   # (tb, C)
    mx = jnp.max(x_ref[...], axis=-1).astype(jnp.float32)             # (tb, C)
    o_ref[0] = _mlp_sigmoid(avg, mx, w1t_ref, w2t_ref).astype(o_ref.dtype)


def _pick_spatial_tile(hw, row_bytes, budget_bytes):
    """Spatial (lane) tile width.

    Returns hw itself when one step fits the budget (full extent is always a
    legal block dim), otherwise the largest multiple of 128 that fits the
    budget.  The tile does NOT have to divide hw: the last spatial block is
    ragged and the kernel masks the tail columns."""
    if hw * row_bytes <= budget_bytes or hw <= 128:
        return hw
    cols = (budget_bytes // row_bytes) // 128 * 128
    cols = max(cols, 128)
    cols = min(cols, 8192)                       # bound the unrolled chunk loop
    cols = min(cols, pl.cdiv(hw, 128) * 128)
    if cols >= hw:
        return hw
    return cols


def channel_attention(x, w_fc1, w_fc2, *, max_batch_tile=8,
                      x_tile_budget_bytes=8 * 1024 * 1024):
    """x: (B, C, H, W).  w_fc1: (C//16, C).  w_fc2: (C, C//16).
    Returns the sigmoid attention map of shape (B, C, 1, 1)."""
    B, C, H, W = x.shape
    hid = w_fc1.shape[0]
    HW = H * W

    # Batch tile: <= max_batch_tile and capped at cdiv(B, 2) so the parallel
    # batch axis has >= 2 entries (both v7x TensorCores busy).  No padding:
    # the last batch block may be ragged; garbage only feeds output rows >= B,
    # which are sliced off below.
    tb = max(1, min(max_batch_tile, pl.cdiv(B, 2))) if B > 1 else 1
    b_tiles = pl.cdiv(B, tb)

    x3 = x.reshape(B, C, HW)                          # keep source dtype
    itemsize = jnp.dtype(x3.dtype).itemsize
    row_bytes = tb * C * itemsize
    thw = _pick_spatial_tile(HW, row_bytes, x_tile_budget_bytes)
    hw_tiles = pl.cdiv(HW, thw)

    w1t = w_fc1.T                                     # (C, hid), source dtype
    w2t = w_fc2.T                                     # (hid, C)

    chunked = (thw % 128 == 0)

    # VMEM limit derived from the actual tiles (replaces a fixed constant).
    w_bytes = (w1t.size + w2t.size) * jnp.dtype(w1t.dtype).itemsize
    x_block_bytes = tb * C * thw * itemsize
    out_block_bytes = tb * C * jnp.dtype(x.dtype).itemsize
    scratch_bytes = 2 * tb * C * 128 * 4 if chunked else 0
    vmem_limit = int(2 * x_block_bytes + 2 * w_bytes + 2 * out_block_bytes
                     + scratch_bytes + (4 << 20))
    vmem_limit = min(max(vmem_limit, 16 << 20), 128 << 20)

    # 3-D output so the out-block's last two dims always equal the array dims
    # (legal for any tb); reshaped/sliced to (B, C) afterwards (tiny).
    out_shape = jax.ShapeDtypeStruct((b_tiles, tb, C), x.dtype)

    if chunked:
        kernel = functools.partial(
            _channel_attention_kernel_tiled, inv_hw=1.0 / HW, hw=HW, thw=thw,
            ragged_tail=(HW % thw != 0))
        out3 = pl.pallas_call(
            kernel,
            out_shape=out_shape,
            grid_spec=pltpu.PrefetchScalarGridSpec(
                num_scalar_prefetch=0,
                grid=(b_tiles, hw_tiles),             # reduction axis last
                in_specs=[
                    pl.BlockSpec((tb, C, thw), lambda b, k: (b, 0, k)),
                    pl.BlockSpec((C, hid), lambda b, k: (0, 0)),   # resident
                    pl.BlockSpec((hid, C), lambda b, k: (0, 0)),
                ],
                out_specs=pl.BlockSpec((1, tb, C), lambda b, k: (b, 0, 0)),
                scratch_shapes=[
                    pltpu.VMEM((tb, C, 128), jnp.float32),   # running sum
                    pltpu.VMEM((tb, C, 128), jnp.float32),   # running max
                ],
            ),
            compiler_params=pltpu.CompilerParams(
                dimension_semantics=("parallel", "arbitrary"),
                vmem_limit_bytes=vmem_limit,
            ),
        )(x3, w1t, w2t)
    else:
        # HW is not a multiple of 128 but fits one block: single spatial step.
        kernel = functools.partial(_channel_attention_kernel_single,
                                   inv_hw=1.0 / HW)
        out3 = pl.pallas_call(
            kernel,
            out_shape=out_shape,
            grid_spec=pltpu.PrefetchScalarGridSpec(
                num_scalar_prefetch=0,
                grid=(b_tiles,),
                in_specs=[
                    pl.BlockSpec((tb, C, HW), lambda b: (b, 0, 0)),
                    pl.BlockSpec((C, hid), lambda b: (0, 0)),
                    pl.BlockSpec((hid, C), lambda b: (0, 0)),
                ],
                out_specs=pl.BlockSpec((1, tb, C), lambda b: (b, 0, 0)),
            ),
            compiler_params=pltpu.CompilerParams(
                dimension_semantics=("parallel",),
                vmem_limit_bytes=vmem_limit,
            ),
        )(x3, w1t, w2t)

    out2d = out3.reshape(b_tiles * tb, C)[:B]
    return out2d.reshape(B, C, 1, 1)


def _reference(x, w_fc1, w_fc2):
    # Pure-JAX reference matching the PyTorch module.
    avg = jnp.mean(x.astype(jnp.float32), axis=(2, 3))      # (B, C)
    mx = jnp.max(x.astype(jnp.float32), axis=(2, 3))        # (B, C)

    def mlp(p):
        h = jnp.maximum(p @ w_fc1.T, 0.0)                   # (B, hid)
        return h @ w_fc2.T                                  # (B, C)

    out = jax.nn.sigmoid(mlp(avg) + mlp(mx))
    return out[:, :, None, None]


if __name__ == "__main__":
    key = jax.random.PRNGKey(0)
    k_x, k_w1, k_w2 = jax.random.split(key, 3)

    # Module hardcodes // 16, so channels must be a multiple of 16.
    B, C, H, W = 2, 64, 16, 16
    hid = C // 16

    x = jax.random.normal(k_x, (B, C, H, W), dtype=jnp.float32)
    w_fc1 = jax.random.normal(k_w1, (hid, C), dtype=jnp.float32) * 0.1
    w_fc2 = jax.random.normal(k_w2, (C, hid), dtype=jnp.float32) * 0.1

    # 1) Default path: chunked lane accumulation, single spatial step,
    #    two batch tiles (tb=1, b_tiles=2).
    ref = _reference(x, w_fc1, w_fc2)
    out = jax.block_until_ready(channel_attention(x, w_fc1, w_fc2))
    assert out.shape == (B, C, 1, 1), out.shape
    assert jnp.allclose(out, ref, atol=1e-5, rtol=1e-5), (
        float(jnp.max(jnp.abs(out - ref))))

    # 2) Multi-step spatial reduction with a ragged spatial tail
    #    (HW=144 -> thw=128, 2 hw steps, masked tail) and a ragged last batch
    #    block (B=3, tb=2) with no wrapper-side padding.
    B2, H2, W2 = 3, 12, 12
    x2 = jax.random.normal(k_x, (B2, C, H2, W2), dtype=jnp.float32)
    ref2 = _reference(x2, w_fc1, w_fc2)
    out2 = jax.block_until_ready(
        channel_attention(x2, w_fc1, w_fc2, x_tile_budget_bytes=32 * 1024))
    assert out2.shape == (B2, C, 1, 1), out2.shape
    assert jnp.allclose(out2, ref2, atol=1e-5, rtol=1e-5), (
        float(jnp.max(jnp.abs(out2 - ref2))))

    # 3) HW < 128 (not a 128-multiple): single-step kernel variant.
    B3, H3, W3 = 2, 7, 7
    x_small = jax.random.normal(k_x, (B3, C, H3, W3), dtype=jnp.float32)
    ref3 = _reference(x_small, w_fc1, w_fc2)
    out3 = jax.block_until_ready(channel_attention(x_small, w_fc1, w_fc2))
    assert out3.shape == (B3, C, 1, 1), out3.shape
    assert jnp.allclose(out3, ref3, atol=1e-5, rtol=1e-5), (
        float(jnp.max(jnp.abs(out3 - ref3))))

    print("KERNEL_OK")
</pallas_src>

<mosaic_0001>
module attributes {stable_mosaic.version = 11 : i64} {
  func.func @_channel_attention_kernel_tiled(%arg0: i32, %arg1: i32, %arg2: memref<1x64x256xf32, #tpu.memory_space<vmem>>, %arg3: memref<64x4xf32, #tpu.memory_space<vmem>>, %arg4: memref<4x64xf32, #tpu.memory_space<vmem>>, %arg5: memref<1x1x64xf32, #tpu.memory_space<vmem>>, %arg6: memref<1x64x128xf32, #tpu.memory_space<vmem>>, %arg7: memref<1x64x128xf32, #tpu.memory_space<vmem>>) attributes {dimension_semantics = [#tpu.dimension_semantics<parallel>, #tpu.dimension_semantics<arbitrary>], iteration_bounds = array<i64: 2, 1>, scalar_prefetch = 0 : i64, scratch_operands = 2 : i64, tpu.core_type = #tpu.core_type<tc>, window_params = [{transform_indices = @transform_0, window_bounds = array<i64: 1, 64, 256>}, {pipeline_mode = #tpu.pipeline_mode<synchronous>, transform_indices = @transform_1, window_bounds = array<i64: 64, 4>}, {pipeline_mode = #tpu.pipeline_mode<synchronous>, transform_indices = @transform_2, window_bounds = array<i64: 4, 64>}, {transform_indices = @transform_3, window_bounds = array<i64: 1, 1, 64>}]} {
    %c0_i32 = arith.constant 0 : i32
    %0 = arith.cmpi eq, %arg1, %c0_i32 : i32
    %1 = arith.extui %0 : i1 to i32
    %c0_i32_0 = arith.constant 0 : i32
    %2 = arith.cmpi ne, %1, %c0_i32_0 : i32
    scf.if %2 {
      %cst = arith.constant 0.000000e+00 : f32
      %16 = vector.broadcast %cst : f32 to vector<1x64x128xf32>
      %c0_19 = arith.constant 0 : index
      %c0_20 = arith.constant 0 : index
      %c0_21 = arith.constant 0 : index
      %17 = vector.load %arg6[%c0_19, %c0_20, %c0_21] : memref<1x64x128xf32, #tpu.memory_space<vmem>>, vector<1x64x128xf32>
      tpu.vector_store %arg6[%c0_19, %c0_20, %c0_21], %16 {strides = array<i32>} : memref<1x64x128xf32, #tpu.memory_space<vmem>>, vector<1x64x128xf32>,
      %cst_22 = arith.constant 0xFF800000 : f32
      %18 = vector.broadcast %cst_22 : f32 to vector<1x64x128xf32>
      %c0_23 = arith.constant 0 : index
      %c0_24 = arith.constant 0 : index
      %c0_25 = arith.constant 0 : index
      %19 = vector.load %arg7[%c0_23, %c0_24, %c0_25] : memref<1x64x128xf32, #tpu.memory_space<vmem>>, vector<1x64x128xf32>
      tpu.vector_store %arg7[%c0_23, %c0_24, %c0_25], %18 {strides = array<i32>} : memref<1x64x128xf32, #tpu.memory_space<vmem>>, vector<1x64x128xf32>,
    } else {
    }
    %c0 = arith.constant 0 : index
    %c0_1 = arith.constant 0 : index
    %c0_2 = arith.constant 0 : index
    %3 = vector.load %arg6[%c0, %c0_1, %c0_2] : memref<1x64x128xf32, #tpu.memory_space<vmem>>, vector<1x64x128xf32>
    %c0_3 = arith.constant 0 : index
    %c0_4 = arith.constant 0 : index
    %c0_5 = arith.constant 0 : index
    %4 = vector.load %arg7[%c0_3, %c0_4, %c0_5] : memref<1x64x128xf32, #tpu.memory_space<vmem>>, vector<1x64x128xf32>
    %c0_6 = arith.constant 0 : index
    %c0_7 = arith.constant 0 : index
    %c0_8 = arith.constant 0 : index
    %5 = vector.load %arg2[%c0_6, %c0_7, %c0_8] : memref<1x64x256xf32, #tpu.memory_space<vmem>>, vector<1x64x128xf32>
    %6 = arith.addf %3, %5 : vector<1x64x128xf32>
    %7 = arith.maximumf %4, %5 : vector<1x64x128xf32>
    %c0_9 = arith.constant 0 : index
    %c0_10 = arith.constant 0 : index
    %c128 = arith.constant 128 : index
    %8 = vector.load %arg2[%c0_9, %c0_10, %c128] : memref<1x64x256xf32, #tpu.memory_space<vmem>>, vector<1x64x128xf32>
    %9 = arith.addf %6, %8 : vector<1x64x128xf32>
    %10 = arith.maximumf %7, %8 : vector<1x64x128xf32>
    %c0_11 = arith.constant 0 : index
    %c0_12 = arith.constant 0 : index
    %c0_13 = arith.constant 0 : index
    %11 = vector.load %arg6[%c0_11, %c0_12, %c0_13] : memref<1x64x128xf32, #tpu.memory_space<vmem>>, vector<1x64x128xf32>
    tpu.vector_store %arg6[%c0_11, %c0_12, %c0_13], %9 {strides = array<i32>} : memref<1x64x128xf32, #tpu.memory_space<vmem>>, vector<1x64x128xf32>,
    %c0_14 = arith.constant 0 : index
    %c0_15 = arith.constant 0 : index
    %c0_16 = arith.constant 0 : index
    %12 = vector.load %arg7[%c0_14, %c0_15, %c0_16] : memref<1x64x128xf32, #tpu.memory_space<vmem>>, vector<1x64x128xf32>
    tpu.vector_store %arg7[%c0_14, %c0_15, %c0_16], %10 {strides = array<i32>} : memref<1x64x128xf32, #tpu.memory_space<vmem>>, vector<1x64x128xf32>,
    %c0_i32_17 = arith.constant 0 : i32
    %13 = arith.cmpi eq, %arg1, %c0_i32_17 : i32
    %14 = arith.extui %13 : i1 to i32
    %c0_i32_18 = arith.constant 0 : i32
    %15 = arith.cmpi ne, %14, %c0_i32_18 : i32
    scf.if %15 {
      %c0_19 = arith.constant 0 : index
      %c0_20 = arith.constant 0 : index
      %c0_21 = arith.constant 0 : index
      %16 = vector.load %arg6[%c0_19, %c0_20, %c0_21] : memref<1x64x128xf32, #tpu.memory_space<vmem>>, vector<1x64x128xf32>
      %cst = arith.constant dense<0.000000e+00> : vector<1x64xf32>
      %17 = vector.multi_reduction <add>, %16, %cst [2] : vector<1x64x128xf32> to vector<1x64xf32>
      %cst_22 = arith.constant 3.906250e-03 : f32
      %18 = vector.broadcast %cst_22 : f32 to vector<1x64xf32>
      %19 = arith.mulf %17, %18 : vector<1x64xf32>
      %c0_23 = arith.constant 0 : index
      %c0_24 = arith.constant 0 : index
      %c0_25 = arith.constant 0 : index
      %20 = vector.load %arg7[%c0_23, %c0_24, %c0_25] : memref<1x64x128xf32, #tpu.memory_space<vmem>>, vector<1x64x128xf32>
      %cst_26 = arith.constant dense<0xFF800000> : vector<1x64xf32>
      %21 = vector.multi_reduction <maximumf>, %20, %cst_26 [2] : vector<1x64x128xf32> to vector<1x64xf32>
      %c0_27 = arith.constant 0 : index
      %c0_28 = arith.constant 0 : index
      %22 = vector.load %arg3[%c0_27, %c0_28] : memref<64x4xf32, #tpu.memory_space<vmem>>, vector<64x4xf32>
      %cst_29 = arith.constant dense<0.000000e+00> : vector<1x4xf32>
      %23 = tpu.matmul %19, %22, %cst_29 {dimension_numbers = #tpu.dot_dimension_numbers<[1], [0], [0], [1], [0, 0, 1, 1], [], []>} : vector<1x64xf32>, vector<64x4xf32>, vector<1x4xf32> -> vector<1x4xf32>
      %cst_30 = arith.constant 0.000000e+00 : f32
      %24 = vector.broadcast %cst_30 : f32 to vector<1x4xf32>
      %25 = arith.maximumf %23, %24 : vector<1x4xf32>
      %c0_31 = arith.constant 0 : index
      %c0_32 = arith.constant 0 : index
      %26 = vector.load %arg3[%c0_31, %c0_32] : memref<64x4xf32, #tpu.memory_space<vmem>>, vector<64x4xf32>
      %cst_33 = arith.constant dense<0.000000e+00> : vector<1x4xf32>
      %27 = tpu.matmul %21, %26, %cst_33 {dimension_numbers = #tpu.dot_dimension_numbers<[1], [0], [0], [1], [0, 0, 1, 1], [], []>} : vector<1x64xf32>, vector<64x4xf32>, vector<1x4xf32> -> vector<1x4xf32>
      %cst_34 = arith.constant 0.000000e+00 : f32
      %28 = vector.broadcast %cst_34 : f32 to vector<1x4xf32>
      %29 = arith.maximumf %27, %28 : vector<1x4xf32>
      %30 = arith.addf %25, %29 : vector<1x4xf32>
      %c0_35 = arith.constant 0 : index
      %c0_36 = arith.constant 0 : index
      %31 = vector.load %arg4[%c0_35, %c0_36] : memref<4x64xf32, #tpu.memory_space<vmem>>, vector<4x64xf32>
      %cst_37 = arith.constant dense<0.000000e+00> : vector<1x64xf32>
      %32 = tpu.matmul %30, %31, %cst_37 {dimension_numbers = #tpu.dot_dimension_numbers<[1], [0], [0], [1], [0, 0, 1, 1], [], []>} : vector<1x4xf32>, vector<4x64xf32>, vector<1x64xf32> -> vector<1x64xf32>
      %33 = arith.negf %32 : vector<1x64xf32>
      %34 = math.exp %33 : vector<1x64xf32>
      %cst_38 = arith.constant 1.000000e+00 : f32
      %35 = vector.broadcast %cst_38 : f32 to vector<1x64xf32>
      %36 = arith.addf %35, %34 : vector<1x64xf32>
      %37 = arith.divf %35, %36 : vector<1x64xf32>
      %c0_39 = arith.constant 0 : index
      %c0_40 = arith.constant 0 : index
      %c0_41 = arith.constant 0 : index
      %38 = vector.load %arg5[%c0_39, %c0_40, %c0_41] : memref<1x1x64xf32, #tpu.memory_space<vmem>>, vector<1x1x64xf32>
      %39 = vector.shape_cast %38 : vector<1x1x64xf32> to vector<1x64xf32>
      %40 = vector.shape_cast %37 : vector<1x64xf32> to vector<1x1x64xf32>
      tpu.vector_store %arg5[%c0_39, %c0_40, %c0_41], %40 {strides = array<i32>} : memref<1x1x64xf32, #tpu.memory_space<vmem>>, vector<1x1x64xf32>,
    } else {
    }
    return
  }
  func.func @transform_0(%arg0: i32, %arg1: i32) -> (i32, i32, i32) {
    %c0_i32 = arith.constant 0 : i32
    %c0_i32_0 = arith.constant 0 : i32
    return %arg0, %c0_i32, %arg1 : i32, i32, i32
  }
  func.func @transform_1(%arg0: i32, %arg1: i32) -> (i32, i32) {
    %c0_i32 = arith.constant 0 : i32
    %c0_i32_0 = arith.constant 0 : i32
    %c0_i32_1 = arith.constant 0 : i32
    return %c0_i32, %c0_i32_0 : i32, i32
  }
  func.func @transform_2(%arg0: i32, %arg1: i32) -> (i32, i32) {
    %c0_i32 = arith.constant 0 : i32
    %c0_i32_0 = arith.constant 0 : i32
    %c0_i32_1 = arith.constant 0 : i32
    return %c0_i32, %c0_i32_0 : i32, i32
  }
  func.func @transform_3(%arg0: i32, %arg1: i32) -> (i32, i32, i32) {
    %c0_i32 = arith.constant 0 : i32
    %c0_i32_0 = arith.constant 0 : i32
    %c0_i32_1 = arith.constant 0 : i32
    return %arg0, %c0_i32, %c0_i32_0 : i32, i32, i32
  }
}

</mosaic_0001>

<bundles_post_ra>
// kernel: tpu_custom_call.1
= control target key start
LH: loop header
LB: loop body
LE: loop exit
PB: predicated region body
PF: predicated region fallthrough
CT: control target
= control target key end

     0   :  { %8 = vsyncpa [#allocation5], 0  ;;  %s1364_s0 = inlined_call_operand.hbm [shape: f32[2,64,256], index: 0, kind: input, shape index: {}]   ;;  %s1365_s1 = inlined_call_operand.vmem [shape: f32[64,4], index: 1, kind: input, shape index: {}]   ;;  %s1366_s2 = inlined_call_operand.vmem [shape: f32[4,64], index: 2, kind: input, shape index: {}]   ;;  %s1367_s3 = inlined_call_operand.hbm [shape: f32[2,1,64], index: 3, kind: output, shape index: {}]  }
   0x1   :  { %10 = vsyncpa [#allocation5 + $0x1], 0 }
   0x2   :  { %11 = vsyncpa [#allocation6], 0 }
   0x3   :  { %13 = vsyncpa [#allocation6 + $0x1], 0  ;;  %s1124_s12 = smov 0   ;;  %s1126_s13 = smov 0  }
   0x4   :  { %s1128_s14 = smov 0   ;;  %s1130_s15 = smov 0  }
   0x5   :  { %s1132_s16 = smov 0   ;;  %s1134_s17 = smov 0  }
   0x6 LB: > { %s807_s18 = sadd.s32 4294967295, %s1095_s17   ;;  %s808_s19 = sadd.s32 4294967294, %s1095_s17   ;;  %s1095_s17 = sphi %s1134_s17, %s19_s17   ;;  %s1091_s16 = sphi %s1132_s16, %s1382_s16   ;;  %s1087_s15 = sphi %s1130_s15, %s1381_s15   ;;  %s1083_s14 = sphi %s1128_s14, %s1380_s14   ;;  %s1079_s13 = sphi %s1126_s13, %s1379_s13   ;;  %s1075_s12 = sphi %s1124_s12, %s1378_s12  }
   0x7   : > { %s31_s20 = sadd.s32 1, %s1091_s16  ;;  %s40_s21 = sadd.s32 1, %s1083_s14 }
   0x8   : > { %p33_p0 = scmp.ge.s32.totalorder %s31_s20, 2  ;;  %p47_p1 = scmp.ne.s32.totalorder %s1083_s14, %s1079_s13 }
   0x9   : > { %p48_p2 = scmp.eq.s32.totalorder %s1095_s17, 0  ;;  %p53_p3 = scmp.ne.s32.totalorder %s1079_s13, %s1075_s12 }
   0xa   : > { %s1384_s20 = smov (%p33_p0, %s31_s20), 0  ;;  %p54_p5 = scmp.eq.s32.totalorder %s807_s18, 0 }
   0xb   : > { %p1165_p4 = por %p48_p2, %p47_p1  ;;  %s35_s23 = ssub.s32 %s1091_s16, %s1384_s20 }
   0xc   : > { %p119_p6 = scmp.eq.s32.totalorder %s807_s18, 1  ;;  %p38_p7 = scmp.eq.s32.totalorder %s35_s23, 0 }
   0xd   : > { %p1171_p8 = por %p54_p5, %p53_p3  ;;  %p125_p10 = scmp.eq.s32.totalorder %s808_s19, 1 }
   0xe   : > { %p1175_p9 = por %p119_p6, %p47_p1  ;;  %p924_p13 = scmp.lt.s32.totalorder %s1095_s17, 2 }
   0xf   : > { %s1180_s26 = scalar_select %p38_p7, %s1083_s14, %s40_s21  }
  0x10   : > { %s1371_s25 = scalar_select %p1175_p9, 1, 0 }
  0x11   : > { %p1182_p11 = por %p125_p10, %p53_p3  ;;  %s151_s28 = sand.u32 1, %s1083_s14  }
  0x12   : > { %s811_s29 = sshll.u32 %s151_s28, 7  ;;  %s824_s30 = sshll.u32 %s1091_s16, 11 }
  0x13   : > { %s1372_s27 = scalar_select %p1182_p11, 1, 0 }
  0x14   : > { %s1193_s6 = scalar_lea.hbm %s1364_s0, %s824_s30  ;;  %s155_s7 = scalar_lea.vmem [#allocation4], %s811_s29 }
  0x15   : > { %s164_s8 = sshll.u32 %s155_s7, 4  ;;  %p1199_p0 = pnand %p924_p13, %p1165_p4  ;;  %s1195_s8 = int_to_ptr.vmem [resolvable:$true] %s164_s8 }
  0x16   : > { %s1204_s10 = scalar_lea.sflag [#allocation5], %s151_s28  ;;  %s983_s11 = scalar_lea.hbm %s1193_s6, 2048 }
  0x17   : > { %p984_p2 = scmp.ne.s32.totalorder %s1193_s6, %s983_s11  ;;  %p985_p3 = pneg %p1199_p0 }
  0x18   : > { %s988_s21 = scalar_lea.hbm %s1364_s0, 4096  ;;  %p989_p4 = scmp.lt.u32.totalorder %s1193_s6, %s1364_s0 }
  0x19   : > { %p986_p5 = pnand %p985_p3, %p984_p2  ;;  %p990_p7 = scmp.lt.u32.totalorder %s988_s21, %s983_s11 }
  0x1a   : > { %p992_p13 = scmp.lt.u32.totalorder %s983_s11, %s1193_s6 }
  0x1b   : > { %p987_p6 = pneg %p986_p5  ;;  %p991_p10 = por %p990_p7, %p989_p4 }
  0x1d   : > { %p993_p12 = por %p992_p13, %p991_p10 }
  0x1f   : > { %p994_p1 = pnand %p993_p12, %p987_p6 }
  0x21   : > { %997 = shalt.err (!%p994_p1)
}
  0x22   : > { %s998_s28 = scalar_lea.vmem %s1195_s8, 2048  ;;  %s1097_s29 = smov [#allocation4]  }
  0x23   : > { %p999_p2 = scmp.ne.s32.totalorder %s1195_s8, %s998_s28  ;;  %s1003_s30 = sshll.u32 %s1097_s29, 4  ;;  %s1004_s30 = int_to_ptr.vmem [resolvable:$false] %s1003_s30 }
  0x24   : > { %s1005_s4 = scalar_lea.vmem %s1004_s30, 4096  ;;  %p1006_p9 = scmp.lt.s32.totalorder %s1195_s8, %s1004_s30 }
  0x25   : > { %p1001_p5 = pnand %p999_p2, %p985_p3  ;;  %p1007_p4 = scmp.lt.s32.totalorder %s1005_s4, %s998_s28 }
  0x27   : > { %p1002_p11 = pneg %p1001_p5  ;;  %p1008_p7 = por %p1007_p4, %p1006_p9 }
  0x29   : > { %p1009_p10 = pnand %p1008_p7, %p1002_p11 }
  0x2b   : > { %1012 = shalt.err (!%p1009_p10)
}
  0x2c   : > { %s1098_s5 = smov 256   ;;  %s1099_s7 = smov 16  }
  0x2d   : > { %919 = dma.hbm_to_vmem [thread:$0]  (!%p1199_p0), %s1193_s6, 2048, %s1195_s8, %s1204_s10, %s1098_s5, %s1098_s5, %s1099_s7  }
  0x2e   : > { %p172_p12 = scmp.lt.s32.totalorder %s1095_s17, 3  ;;  %p1374_p1 = scmp.ge.s32.totalorder %s1095_s17, 1 }
  0x30   : > { %p173_p3 = pnand %p1374_p1, %p172_p12 }
  0x31   : > { %s1236_s11 = sand.u32 (!%p173_p3), 1, %s1079_s13  }
  0x32   : > { %176 = sbr.rel (%p173_p3) target bundleno = 704 (0x2c0), region = 32  ;;  %s815_s18 = sshll.u32 (!%p173_p3), %s1236_s11, 7 }
  0x33   : > { %s179_s19 = scalar_lea.sflag (!%p173_p3), [#allocation5], %s1236_s11  ;;  %s1240_s21 = scalar_lea.vmem (!%p173_p3), [#allocation4], %s815_s18 }
  0x39   : > { %1066 = dma.done.wait (%p1171_p8), %s179_s19, 2048  }
  0x3a   : > { %1068 = vsyncadd (%p1171_p8), %s179_s19, 4294965248  ;;  %v243_v0 = vld [vmem:[%s1240_s21 + $0x20] sm:$0xff]  ;;  %v267_v1 = vld [vmem:[%s1240_s21 + $0x28] sm:$0xff]  ;;  %v1100_v35 = vmov 0.0|0.0   ;;  %vm1101_vm0 = vmmov 0   ;;  %v1102_v45 = vmov 0.0   ;;  %v380_v48 = vlaneseq }
  0x3b   : > { %v241_v2 = vld [vmem:[%s1240_s21] sm:$0xff]  ;;  %v275_v3 = vadd.f32 %v267_v1, %v243_v0  ;;  %v265_v4 = vld [vmem:[%s1240_s21 + $0x8] sm:$0xff]  ;;  %v244_v5 = vld [vmem:[%s1240_s21 + $0x30] sm:$0xff]  ;;  %v283_v16 = vmax.f32 %v243_v0, %v267_v1  ;;  %888 = vmatprep.subr.bf16.mxu0 %v1100_v35  ;;  %900 = vmatprep.subr.bf16.mxu1 %v1100_v35  ;;  %vm391_vm1 = vcmask 130112   ;;  %vm398_vm2 = vcmask 195712   ;;  %s821_s8 = sshll.u32 %s1087_s15, 4 }
  0x3c   : > { %v268_v6 = vld [vmem:[%s1240_s21 + $0x38] sm:$0xff]  ;;  %v273_v7 = vadd.f32 %v265_v4, %v241_v2  ;;  %v242_v8 = vld [vmem:[%s1240_s21 + $0x10] sm:$0xff]  ;;  %v281_v13 = vmax.f32 %v241_v2, %v265_v4  ;;  %v245_v14 = vld [vmem:[%s1240_s21 + $0x40] sm:$0xff]  ;;  %861 = vmatprep.mubr.msk.f32.mxu0 %vm1101_vm0, %v1102_v45  ;;  %880 = vmatprep.mubr.msk.f32.mxu1 %vm1101_vm0, %v1102_v45  ;;  %v381_v51 = vand.u32 127, %v380_v48  ;;  %v383_v55 = vshrl.u32 %v380_v48, 7  ;;  %s203_s9 = scalar_lea.vmem [#allocation7], %s1236_s11  ;;  %s1315_s28 = scalar_lea.hbm %s1367_s3, %s821_s8 }
  0x3d   : > { %v266_v9 = vld [vmem:[%s1240_s21 + $0x18] sm:$0xff]  ;;  %320 = vadd.xlane.f32.xlu1 %v275_v3  ;;  %v276_v10 = vadd.f32 %v268_v6, %v244_v5  ;;  %v269_v15 = vld [vmem:[%s1240_s21 + $0x48] sm:$0xff]  ;;  %v246_v18 = vld [vmem:[%s1240_s21 + $0x50] sm:$0xff]  ;;  %v284_v20 = vmax.f32 %v244_v5, %v268_v6  ;;  %vm405_vm3 = vcmask 261312   ;;  %vm412_vm4 = vcmask 326912   ;;  %s730_s10 = sshll.u32 %s203_s9, 4  ;;  %s1317_s10 = int_to_ptr.vmem [resolvable:$true] %s730_s10 }
  0x3e   : > { %316 = vadd.xlane.f32.xlu0 %v273_v7  ;;  %v274_v11 = vadd.f32 %v266_v9, %v242_v8  ;;  %v282_v12 = vmax.f32 %v242_v8, %v266_v9  ;;  %v277_v17 = vadd.f32 %v269_v15, %v245_v14  ;;  %v270_v19 = vld [vmem:[%s1240_s21 + $0x58] sm:$0xff]  ;;  %v247_v22 = vld [vmem:[%s1240_s21 + $0x60] sm:$0xff]  ;;  %v271_v23 = vld [vmem:[%s1240_s21 + $0x68] sm:$0xff]  ;;  %v285_v24 = vmax.f32 %v245_v14, %v269_v15  ;;  %s718_s29 = scalar_lea.sflag [#allocation6], %s1236_s11  ;;  %s1013_s30 = scalar_lea.vmem %s1317_s10, 16 }
  0x3f   : > { %v278_v21 = vadd.f32 %v270_v19, %v246_v18  ;;  %v279_v25 = vadd.f32 %v271_v23, %v247_v22  ;;  %v248_v26 = vld [vmem:[%s1240_s21 + $0x70] sm:$0xff]  ;;  %v272_v27 = vld [vmem:[%s1240_s21 + $0x78] sm:$0xff]  ;;  %v286_v28 = vmax.f32 %v246_v18, %v270_v19  ;;  %v287_v31 = vmax.f32 %v247_v22, %v271_v23  ;;  %v364_v32 = vld [vmem:[%s1365_s1] sm:$0xff]  ;;  %p1014_p8 = scmp.ne.s32.totalorder %s1317_s10, %s1013_s30  ;;  %p1375_p9 = scmp.ne.s32.totalorder %s1371_s25, 0 }
  0x40   : > { %v280_v29 = vadd.f32 %v272_v27, %v248_v26  ;;  %v288_v30 = vmax.f32 %v248_v26, %v272_v27  ;;  %v365_v33 = vld [vmem:[%s1365_s1 + $0x8] sm:$0xff]  ;;  %v366_v36 = vld [vmem:[%s1365_s1 + $0x10] sm:$0xff]  ;;  %v367_v37 = vld [vmem:[%s1365_s1 + $0x18] sm:$0xff]  ;;  %v386_v52 = vadd.s32 4294967288, %v381_v51  ;;  %v393_v59 = vadd.s32 4294967280, %v381_v51  ;;  %s1103_s15 = smov [#allocation7]  }
  0x41   : > { %322 = vadd.xlane.f32.xlu1 %v276_v10  ;;  %v889_v34 = vpack.c.bf16 %v365_v33, %v364_v32  ;;  %v892_v38 = vpack.c.bf16 %v367_v37, %v366_v36  ;;  %v368_v39 = vld [vmem:[%s1365_s1 + $0x20] sm:$0xff]  ;;  %v369_v40 = vld [vmem:[%s1365_s1 + $0x28] sm:$0xff]  ;;  %v370_v42 = vld [vmem:[%s1365_s1 + $0x30] sm:$0xff]  ;;  %v384_v61 = vsub.s32 %v381_v51, %v383_v55  ;;  %v400_v63 = vadd.s32 4294967272, %v381_v51  ;;  %p1015_p11 = pnand %p1014_p8, %p1375_p9  ;;  %s1017_s4 = sshll.u32 %s1103_s15, 4  ;;  %s1018_s4 = int_to_ptr.vmem [resolvable:$false] %s1017_s4 }
  0x42   : > { %318 = vadd.xlane.f32.xlu0 %v274_v11  ;;  %v895_v41 = vpack.c.bf16 %v369_v40, %v368_v39  ;;  %v371_v43 = vld [vmem:[%s1365_s1 + $0x38] sm:$0xff]  ;;  %v389_v56 = vsub.s32 %v386_v52, %v383_v55  ;;  %v407_v0 = vadd.s32 4294967264, %v381_v51  ;;  %v414_v3 = vadd.s32 4294967256, %v381_v51  ;;  %s1019_s5 = scalar_lea.vmem %s1018_s4, 32  ;;  %p1020_p6 = scmp.lt.s32.totalorder %s1317_s10, %s1018_s4 }
  0x43   : > { %890 = vmatpush3.bf16.msra.mxu0 %v889_v34  ;;  %902 = vmatpush3.bf16.msra.mxu1 %v889_v34  ;;  %v898_v44 = vpack.c.bf16 %v371_v43, %v370_v42  ;;  %v396_v4 = vsub.s32 %v393_v59, %v383_v55  ;;  %v421_v7 = vadd.s32 4294967248, %v381_v51  ;;  %v403_v9 = vsub.s32 %v400_v63, %v383_v55  ;;  %p1016_p0 = pneg %p1015_p11  ;;  %p1021_p13 = scmp.lt.s32.totalorder %s1019_s5, %s1013_s30 }
  0x44   : > { %891 = vmatprep.subr.bf16.mxu0 %v1100_v35  ;;  %903 = vmatprep.subr.bf16.mxu1 %v1100_v35  ;;  %v410_v11 = vsub.s32 %v407_v0, %v383_v55  ;;  %v417_v14 = vsub.s32 %v414_v3, %v383_v55  ;;  %vm419_vm5 = vcmask 392512   ;;  %vm426_vm6 = vcmask 458112  }
  0x45   : > { %350 = vmax.xlane.f32.xlu1 %v282_v12  ;;  %v424_v19 = vsub.s32 %v421_v7, %v383_v55  ;;  %vm433_vm7 = vcmask 523712   ;;  %vm435_vm8 = vcmask 523264   ;;  %vm635_vm9 = vcmask 1043456   ;;  %p1022_p2 = por %p1021_p13, %p1020_p6 }
  0x46   : > { %348 = vmax.xlane.f32.xlu0 %v281_v13  ;;  %vm631_vm10 = vcmask 31744   ;;  %vm715_vm11 = vcmask 516096  }
  0x47   : > { %893 = vmatpush3.bf16.msra.mxu0 %v892_v38  ;;  %905 = vmatpush3.bf16.msra.mxu1 %v892_v38  ;;  %p1023_p5 = pnand %p1022_p2, %p1016_p0 }
  0x48   : > { %894 = vmatprep.subr.bf16.mxu0 %v1100_v35  ;;  %906 = vmatprep.subr.bf16.mxu1 %v1100_v35 }
  0x49   : > { %352 = vmax.xlane.f32.xlu1 %v283_v16 }
  0x4a   : > { %324 = vadd.xlane.f32.xlu0 %v277_v17  ;;  %v428_v17 = vadd.s32 4294967240, %v381_v51 }
  0x4b   : > { %896 = vmatpush3.bf16.msra.mxu0 %v895_v41  ;;  %908 = vmatpush3.bf16.msra.mxu1 %v895_v41 }
  0x4c   : > { %897 = vmatprep.subr.bf16.mxu0 %v1100_v35  ;;  %909 = vmatprep.subr.bf16.mxu1 %v1100_v35 }
  0x4d   : > { %354 = vmax.xlane.f32.xlu1 %v284_v20 }
  0x4e   : > { %326 = vadd.xlane.f32.xlu0 %v278_v21 }
  0x4f   : > { %899 = vmatpush3.bf16.msra.mxu0 %v898_v44  ;;  %911 = vmatpush3.bf16.msra.mxu1 %v898_v44 }
  0x50   : > { %883 = vmatprep.subr.mxu0 %v1102_v45 }
  0x51   : > { %356 = vmax.xlane.f32.xlu1 %v285_v24 }
  0x52   : > { %328 = vadd.xlane.f32.xlu0 %v279_v25 }
  0x55   : > { %358 = vmax.xlane.f32.xlu1 %v286_v28 }
  0x56   : > { %330 = vadd.xlane.f32.xlu0 %v280_v29 }
  0x59   : > { %362 = vmax.xlane.f32.xlu1 %v288_v30  ;;  %v431_v30 = vsub.s32 %v428_v17, %v383_v55  ;;  %v630_v55 = vld [vmem:[%s1366_s2] sm:$0xf] }
  0x5a   : > { %360 = vmax.xlane.f32.xlu0 %v287_v31 }
  0xca   : > { %v321_v46 = vpop.xlane.xlu1 %320 }
  0xcb   : > { %v317_v47 = vpop.xlane.xlu0 %316  ;;  %v334_v5 = vmul.f32 0.00390625, %v321_v46 }
  0xcc   : > { %v332_v62 = vmul.f32 0.00390625, %v317_v47 }
  0xcd   : > { %v397_v18 = vrot.slane %v334_v5, %v396_v4 }
  0xce   : > { %v323_v49 = vpop.xlane.xlu1 %322  ;;  %v385_v8 = vrot.slane %v332_v62, %v384_v61 }
  0xcf   : > { %v319_v50 = vpop.xlane.xlu0 %318  ;;  %v335_v10 = vmul.f32 0.00390625, %v323_v49 }
  0xd0   : > { %v333_v57 = vmul.f32 0.00390625, %v319_v50 }
  0xd1   : > { %v404_v21 = vrot.slane %v335_v10, %v403_v9 }
  0xd2   : > { %v351_v53 = vpop.xlane.xlu1 %350  ;;  %v390_v1 = vrot.slane %v333_v57, %v389_v56 }
  0xd3   : > { %v349_v54 = vpop.xlane.xlu0 %348  ;;  %v524_v23 = vrot.slane %v351_v53, %v389_v56 }
  0xd4   : > { %v392_v13 = vsel %vm391_vm1, %v390_v1, %v385_v8  ;;  %v520_v24 = vrot.slane %v349_v54, %v384_v61 }
  0xd5   : > { %v399_v25 = vsel %vm398_vm2, %v397_v18, %v392_v13 }
  0xd6   : > { %v353_v58 = vpop.xlane.xlu1 %352  ;;  %v406_v34 = vsel %vm405_vm3, %v404_v21, %v399_v25  ;;  %v525_v37 = vsel %vm391_vm1, %v524_v23, %v520_v24 }
  0xd7   : > { %v325_v60 = vpop.xlane.xlu0 %324  ;;  %v529_v27 = vrot.slane %v353_v58, %v396_v4 }
  0xd8   : > { %v336_v12 = vmul.f32 0.00390625, %v325_v60 }
  0xd9   : > { %v530_v40 = vsel %vm398_vm2, %v529_v27, %v525_v37 }
  0xda   : > { %v355_v2 = vpop.xlane.xlu1 %354  ;;  %v411_v26 = vrot.slane %v336_v12, %v410_v11 }
  0xdb   : > { %v327_v6 = vpop.xlane.xlu0 %326  ;;  %v534_v31 = vrot.slane %v355_v2, %v403_v9 }
  0xdc   : > { %v337_v15 = vmul.f32 0.00390625, %v327_v6  ;;  %v413_v38 = vsel %vm412_vm4, %v411_v26, %v406_v34 }
  0xdd   : > { %v535_v44 = vsel %vm405_vm3, %v534_v31, %v530_v40 }
  0xde   : > { %v357_v16 = vpop.xlane.xlu1 %356  ;;  %v418_v28 = vrot.slane %v337_v15, %v417_v14 }
  0xdf   : > { %v329_v20 = vpop.xlane.xlu0 %328  ;;  %v539_v35 = vrot.slane %v357_v16, %v410_v11 }
  0xe0   : > { %v338_v22 = vmul.f32 0.00390625, %v329_v20  ;;  %v420_v41 = vsel %vm419_vm5, %v418_v28, %v413_v38 }
  0xe1   : > { %v540_v49 = vsel %vm412_vm4, %v539_v35, %v535_v44 }
  0xe2   : > { %v359_v29 = vpop.xlane.xlu1 %358  ;;  %v425_v32 = vrot.slane %v338_v22, %v424_v19 }
  0xe3   : > { %v331_v33 = vpop.xlane.xlu0 %330  ;;  %v544_v39 = vrot.slane %v359_v29, %v417_v14 }
  0xe4   : > { %v339_v36 = vmul.f32 0.00390625, %v331_v33  ;;  %v427_v48 = vsel %vm426_vm6, %v425_v32, %v420_v41 }
  0xe5   : > { %v545_v52 = vsel %vm419_vm5, %v544_v39, %v540_v49 }
  0xe6   : > { %v432_v42 = vrot.slane %v339_v36, %v431_v30  ;;  %v363_v43 = vpop.xlane.xlu1 %362 }
  0xe7   : > { %v361_v46 = vpop.xlane.xlu0 %360  ;;  %v554_v47 = vrot.slane %v363_v43, %v431_v30 }
  0xe8   : > { %v549_v50 = vrot.slane %v361_v46, %v424_v19  ;;  %v434_v51 = vsel %vm433_vm7, %v432_v42, %v427_v48 }
  0xe9   : > { %862 = vmatmul.mubr.msk.f32.vlgmr.msra.gmra.mrb[0].mxu0 %vm435_vm8, %v434_v51 }
  0xea   : > { %v550_v53 = vsel %vm426_vm6, %v549_v50, %v545_v52  ;;  %885 = vmatprep.mubr.msk.f32.mxu0 %vm1101_vm0, %v1102_v45  ;;  %884 = vmatpush3.msk.msra.mxu0 %vm635_vm9, %v630_v55 }
  0xeb   : > { %v555_v54 = vsel %vm433_vm7, %v554_v47, %v550_v53 }
  0xec   : > { %881 = vmatmul.mubr.msk.f32.vlgmr.msra.gmra.mrb[0].mxu1 %vm435_vm8, %v555_v54 }
 0x1bc   : > { %v504_v56 = vpop.f32.mrb[0].mxu0 }
 0x1bd   : > { %v863_v57 = vpop.f32.mrb[1].mxu0  ;;  %v508_v59 = vmax.f32 %v504_v56, 0.0 }
 0x1bf   : > { %v624_v58 = vpop.f32.mrb[0].mxu1 }
 0x1c0   : > { %v628_v60 = vmax.f32 %v624_v58, 0.0  ;;  %v882_v61 = vpop.f32.mrb[1].mxu1 }
 0x1c2   : > { %v629_v62 = vadd.f32 %v628_v60, %v508_v59 }
 0x1c4   : > { %886 = vmatmul.mubr.msk.f32.vlgmr.msra.gmra.mrb[2].mxu0 %vm631_vm10, %v629_v62 }
 0x297   : > { %v705_v45 = vpop.f32.mrb[2].mxu0 }
 0x298   : > { %v820_v63 = vmul.f32 -1.442695, %v705_v45  ;;  %v887_v0 = vpop.f32.mrb[3].mxu0 }
 0x29a   : > { %979 = vpow2.f32 %v820_v63 }
 0x2a4   : > { %v980_v1 = vpop.eup %979 }
 0x2a5   : > { %v712_v2 = vadd.f32 1.0, %v980_v1 }
 0x2a7   : > { %981 = vrcp.f32 %v712_v2 }
 0x2b1   : > { %v982_v3 = vpop.eup %981 }
 0x2b2   : > { %716 = vst.msk [vmem:[%s203_s9] sm:$0x1] %vm715_vm11, %v982_v3 }
 0x2b3   : > { %1026 = shalt.err (!%p1023_p5)
}
 0x2b4   : > { %s1027_s11 = scalar_lea.hbm %s1315_s28, 16  ;;  %s1031_s19 = scalar_lea.hbm %s1367_s3, 32 }
 0x2b5   : > { %p1028_p4 = scmp.ne.s32.totalorder %s1315_s28, %s1027_s11  ;;  %p1032_p12 = scmp.lt.u32.totalorder %s1315_s28, %s1367_s3 }
 0x2b6   : > { %p1033_p1 = scmp.lt.u32.totalorder %s1031_s19, %s1027_s11  ;;  %p1035_p8 = scmp.lt.u32.totalorder %s1027_s11, %s1315_s28 }
 0x2b7   : > { %p1029_p7 = pnand %p1028_p4, %p1375_p9 }
 0x2b8   : > { %p1034_p3 = por %p1033_p1, %p1032_p12 }
 0x2b9   : > { %p1030_p10 = pneg %p1029_p7 }
 0x2ba   : > { %p1036_p11 = por %p1035_p8, %p1034_p3 }
 0x2bc   : > { %p1037_p0 = pnand %p1036_p11, %p1030_p10 }
 0x2be   : > { %1040 = shalt.err (!%p1037_p0)
}
 0x2bf   : > { %914 = dma.vmem_to_hbm [thread:$0]  (%p1375_p9), %s1317_s10, 16, %s1315_s28, %s718_s29  }
 0x2c0 PF: > { %s742_s6 = sand.u32 1, %s1075_s12   ;;  %p1376_p6 = scmp.ne.s32.totalorder %s1372_s27, 0 }
 0x2c1   : > { %p1377_p13 = scmp.ge.s32.totalorder %s1095_s17, 2  ;;  %s743_s8 = scalar_lea.sflag [#allocation6], %s742_s6 }
 0x2c3   : > { %p921_p2 = pnand %p1377_p13, %p1376_p6 }
 0x2c5   : > { %1070 = dma.done.wait (!%p921_p2), %s743_s8, 16  }
 0x2c6   : > { %1072 = vsyncadd (!%p921_p2), %s743_s8, 4294967280  ;;  %s19_s17 = sadd.s32 1, %s1095_s17   ;;  %s1378_s12 = smov %s1079_s13 }
 0x2c7   : > { %p16_p5 = scmp.ge.s32.totalorder %s19_s17, 4   ;;  %s1379_s13 = smov %s1083_s14 }
 0x2c8   : > { %s1380_s14 = smov %s1180_s26  ;;  %s1381_s15 = smov %s1091_s16 }
 0x2c9   : > { %s1382_s16 = smov %s1384_s20  ;;  %18 = sbr.rel (!%p16_p5) target bundleno = 6 (0x6), region = 85 }
 0x2d0   :  { %747 = vsyncpa [#allocation5], 1 }
 0x2d1   :  { %749 = vsyncpa [#allocation5 + $0x1], 1 }
 0x2d2   :  { %750 = vsyncpa [#allocation6], 1 }
 0x2d3   :  { %752 = vsyncpa [#allocation6 + $0x1], 1 }

</bundles_post_ra>
